<compile_context>
chip_gen: v6e
topology: v6e:2x2x1
jax: 0.10.0
libtpu: 0.0.40
codegen_flags: <defaults>
</compile_context>

<pallas_src>
import jax
import jax.numpy as jnp
from jax.experimental import pallas as pl
from jax.experimental.pallas import tpu as pltpu

_MAX_DMA_CHUNKS = 8                   # one DMA semaphore per chunk
_MIN_CHUNK_BYTES = 1 * 1024 * 1024    # don't split copies below ~1 MiB/chunk


def _make_dma_kernel(bounds):
    """Build a kernel issuing one HBM->HBM DMA per (start, length) chunk.

    `bounds` is a static tuple of (start, length) pairs along axis 0 of the
    array; an empty tuple means "copy the whole ref with a single DMA".
    """

    def kernel(x_hbm, o_hbm, sem):
        if not bounds:
            cp = pltpu.make_async_copy(x_hbm, o_hbm, sem.at[0])
            cp.start()
            cp.wait()
            return
        copies = []
        for k, (start, length) in enumerate(bounds):
            cp = pltpu.make_async_copy(
                x_hbm.at[pl.ds(start, length)],
                o_hbm.at[pl.ds(start, length)],
                sem.at[k],
            )
            cp.start()              # put every chunk in flight
            copies.append(cp)
        for cp in copies:           # then drain them all
            cp.wait()

    return kernel


def _chunk_bounds(lead, nbytes):
    """Static (start, length) chunks of the leading dim for large copies."""
    if lead < 2 or nbytes < 2 * _MIN_CHUNK_BYTES:
        return ()
    n_chunks = int(min(_MAX_DMA_CHUNKS, lead, max(2, nbytes // _MIN_CHUNK_BYTES)))
    base, rem = divmod(lead, n_chunks)
    bounds, start = [], 0
    for k in range(n_chunks):
        length = base + (1 if k < rem else 0)
        bounds.append((start, length))
        start += length
    return tuple(bounds)


def identity(x: jax.Array, *, copy: bool = True) -> jax.Array:
    """Pallas implementation of Identity.forward.

    copy=False returns `x` itself (exact nn.Identity semantics, zero HBM
    traffic) and is the preferred API when a fresh buffer is not required.
    copy=True materializes the result with direct HBM->HBM DMA (no VMEM
    staging, no grid/pipeline overhead).
    """
    if not copy or x.size == 0 or x.ndim == 0:
        return x

    nbytes = x.size * x.dtype.itemsize
    bounds = _chunk_bounds(x.shape[0], nbytes)
    n_sems = max(1, len(bounds))

    return pl.pallas_call(
        _make_dma_kernel(bounds),
        out_shape=jax.ShapeDtypeStruct(x.shape, x.dtype),
        in_specs=[pl.BlockSpec(memory_space=pl.ANY)],
        out_specs=pl.BlockSpec(memory_space=pl.ANY),
        scratch_shapes=[pltpu.SemaphoreType.DMA((n_sems,))],
        cost_estimate=pl.CostEstimate(
            flops=0, transcendentals=0, bytes_accessed=2 * nbytes
        ),
    )(x)


if __name__ == "__main__":
    key = jax.random.PRNGKey(0)

    # Primary test: small NCHW activation (single whole-array DMA path).
    x = jax.random.normal(key, (2, 4, 16, 16), dtype=jnp.float32)
    y = identity(x)
    jax.block_until_ready(y)
    assert y.shape == x.shape, f"shape mismatch: {y.shape} vs {x.shape}"
    assert y.dtype == x.dtype, f"dtype mismatch: {y.dtype} vs {x.dtype}"
    assert bool(jnp.all(y == x)), "identity output differs from input"

    # Secondary test: 2 MiB tensor to exercise the chunked multi-DMA path.
    x2 = jax.random.normal(jax.random.PRNGKey(0), (8, 64, 1024), dtype=jnp.float32)
    y2 = identity(x2)
    jax.block_until_ready(y2)
    assert y2.shape == x2.shape and y2.dtype == x2.dtype
    assert bool(jnp.all(y2 == x2)), "chunked identity output differs from input"

    print("KERNEL_OK")
</pallas_src>

<mosaic_0001>
module attributes {stable_mosaic.version = 11 : i64} {
  func.func @kernel(%arg0: memref<2x4x16x16xf32, #tpu.memory_space<any>>, %arg1: memref<2x4x16x16xf32, #tpu.memory_space<any>>, %arg2: memref<1x!tpu.dma_semaphore, #tpu.memory_space<semaphore_mem>>) attributes {dimension_semantics = [], scalar_prefetch = 0 : i64, scratch_operands = 1 : i64, tpu.core_type = #tpu.core_type<tc>} {
    %c0_i32 = arith.constant 0 : i32
    %0 = tpu.memref_slice %arg2[%c0_i32] : memref<1x!tpu.dma_semaphore, #tpu.memory_space<semaphore_mem>> -> memref<1x!tpu.dma_semaphore, #tpu.memory_space<semaphore_mem>>
    %1 = tpu.memref_squeeze %0 : memref<1x!tpu.dma_semaphore, #tpu.memory_space<semaphore_mem>> -> memref<!tpu.dma_semaphore, #tpu.memory_space<semaphore_mem>>
    tpu.enqueue_dma source(%arg0 : memref<2x4x16x16xf32, #tpu.memory_space<any>>) target(%arg1 : memref<2x4x16x16xf32, #tpu.memory_space<any>>) target_semaphore(%1 : memref<!tpu.dma_semaphore, #tpu.memory_space<semaphore_mem>>)
    %c0_i32_0 = arith.constant 0 : i32
    %2 = tpu.memref_slice %arg2[%c0_i32_0] : memref<1x!tpu.dma_semaphore, #tpu.memory_space<semaphore_mem>> -> memref<1x!tpu.dma_semaphore, #tpu.memory_space<semaphore_mem>>
    %3 = tpu.memref_squeeze %2 : memref<1x!tpu.dma_semaphore, #tpu.memory_space<semaphore_mem>> -> memref<!tpu.dma_semaphore, #tpu.memory_space<semaphore_mem>>
    tpu.wait_dma2 semaphore(%3 : memref<!tpu.dma_semaphore, #tpu.memory_space<semaphore_mem>>) src(%arg0 : memref<2x4x16x16xf32, #tpu.memory_space<any>>) dst(%arg1 : memref<2x4x16x16xf32, #tpu.memory_space<any>>)
    return
  }
}

</mosaic_0001>

<bundles_post_ra>
// kernel: tpu_custom_call.1
= control target key start
LH: loop header
LB: loop body
LE: loop exit
PB: predicated region body
PF: predicated region fallthrough
CT: control target
= control target key end

     0   :  { %s30_s6 = smov [#allocation2]   ;;  %s31_s7 = smov 131072   ;;  %s49_s0 = inlined_call_operand.hbm [shape: f32[2,4,16,16], index: 0, kind: input, shape index: {}]   ;;  %s50_s1 = inlined_call_operand.hbm [shape: f32[2,4,16,16], index: 1, kind: output, shape index: {}]  }
   0x1   :  { %s32_s8 = smov 0  }
   0x2   :  { %12 = dma.general %s49_s0, 2048, %s50_s1, %s30_s6, %s31_s7, [#allocation4], %s32_s8, 0  }
   0x3   :  { %28 = dma.done.wait [#allocation2], 2048 }
   0x4   :  { %29 = vsyncadd [#allocation2], 4294965248 }
   0x5   :  { %18 = vsyncmov [#allocation2] }
   0x8   :  { %s19_s13 = vpop.sfrf %18 }
   0x9   :  { %p24_p0 = scmp.ne.s32.totalorder %s19_s13, 0 }
   0xb   :  { %23 = shalt.err (%p24_p0)  }

</bundles_post_ra>
